<compile_context>
chip_gen: v6e
topology: v6e:2x2x1
jax: 0.10.0
libtpu: 0.0.40
codegen_flags: <defaults>
</compile_context>

<pallas_src>
import functools

import jax
import jax.numpy as jnp
from jax.experimental import pallas as pl
from jax.experimental.pallas import tpu as pltpu

ALPHA = 0.9
GAMMA = 2
LANES = 128


def _chip_plan():
    """Generation-aware tiling / VMEM / core-split plan."""
    kind = ""
    try:
        kind = (jax.devices()[0].device_kind or "").lower()
    except Exception:
        pass
    if "v7" in kind or "7x" in kind:
        # 2 TensorCores/chip, 64 MiB VMEM/TC, ~3.2 TB/s HBM per TC.
        return dict(core_splits=2, block_bytes=4 << 20, vmem_limit=48 << 20)
    if "v6" in kind:
        return dict(core_splits=1, block_bytes=4 << 20, vmem_limit=64 << 20)
    if "v5" in kind:
        return dict(core_splits=1, block_bytes=4 << 20, vmem_limit=64 << 20)
    # Unknown chip: conservative sizes that fit any default scoped-VMEM limit.
    return dict(core_splits=1, block_bytes=1 << 20, vmem_limit=None)


def _bce_sum_kernel(p_ref, l_ref, o_ref, *, rows, block_rows, blocks_per_core,
                    acc_rows):
    """Accumulate per-lane/sublane partial sums of BCE-with-logits into o_ref."""
    c = pl.program_id(0)          # "parallel" axis (TensorCore split on v7x)
    i = pl.program_id(1)          # "arbitrary" axis (row blocks, sequential)

    @pl.when(i == 0)
    def _init():
        o_ref[...] = jnp.zeros_like(o_ref)

    # Logical (unclamped) block id -> starting row of this block.
    # TODO(synk): int32 row arithmetic limits inputs to < 2**31 * 128 elements.
    block_idx = c * blocks_per_core + i
    row_start = block_idx * block_rows

    def _accumulate(bce):
        if acc_rows > 1:
            # Reduce only down to one (8,128) vreg (pure VPU adds); the final
            # cross-sublane/lane reduce happens once in the wrapper.
            contrib = bce.reshape(block_rows // acc_rows, acc_rows, LANES).sum(axis=0)
        else:
            contrib = jnp.sum(bce, axis=0, keepdims=True)
        o_ref[...] += contrib

    @pl.when(row_start < rows)       # phantom blocks skip all EUP/VALU work
    def _live():
        x = p_ref[...].astype(jnp.float32)
        y = l_ref[...].astype(jnp.float32)
        # Numerically-stable BCE with logits (matches torch.BCEWithLogitsLoss):
        #   max(x, 0) - x*y + log1p(exp(-|x|))
        bce = jnp.maximum(x, 0.0) - x * y + jnp.log1p(jnp.exp(-jnp.abs(x)))

        is_full = (row_start + block_rows) <= rows

        @pl.when(is_full)
        def _full_block():
            # Steady state: unmasked per-lane accumulate.
            _accumulate(bce)

        @pl.when(jnp.logical_not(is_full))
        def _ragged_block():
            # Last, partially-filled block: mask out-of-bounds rows with a
            # select so garbage/NaN in the padded region cannot propagate.
            rows_io = jax.lax.broadcasted_iota(jnp.int32, bce.shape, 0)
            mask = rows_io < (rows - row_start)
            _accumulate(jnp.where(mask, bce, 0.0))


def _bce_sum_pallas(p2, l2, plan):
    """Sum of elementwise BCE-with-logits over a (rows, 128) array pair."""
    rows = p2.shape[0]
    itemsize = max(p2.dtype.itemsize, l2.dtype.itemsize)
    max_block_rows = max(8, (plan["block_bytes"] // (LANES * itemsize)) // 8 * 8)
    block_rows = rows if rows <= max_block_rows else max_block_rows
    acc_rows = 8 if block_rows % 8 == 0 else 1

    total_blocks = int(pl.cdiv(rows, block_rows))
    splits = min(plan["core_splits"], total_blocks)
    blocks_per_core = int(pl.cdiv(total_blocks, splits))
    grid = (splits, blocks_per_core)

    def in_map(c, i):
        # Clamp so phantom / ragged blocks DMA in-bounds data; the kernel
        # masks / skips their contribution using the logical block index.
        return (jnp.minimum(c * blocks_per_core + i, total_blocks - 1), 0)

    kernel = functools.partial(
        _bce_sum_kernel, rows=rows, block_rows=block_rows,
        blocks_per_core=blocks_per_core, acc_rows=acc_rows)

    n_main = rows * LANES
    cost = pl.CostEstimate(
        flops=8 * n_main,
        transcendentals=2 * n_main,
        bytes_accessed=n_main * (p2.dtype.itemsize + l2.dtype.itemsize)
        + splits * acc_rows * LANES * 4,
    )

    compiler_kwargs = dict(dimension_semantics=("parallel", "arbitrary"))
    if plan["vmem_limit"] is not None:
        compiler_kwargs["vmem_limit_bytes"] = plan["vmem_limit"]

    partials = pl.pallas_call(
        kernel,
        out_shape=jax.ShapeDtypeStruct((splits, acc_rows, LANES), jnp.float32),
        grid_spec=pltpu.PrefetchScalarGridSpec(
            num_scalar_prefetch=0,
            grid=grid,
            in_specs=[
                pl.BlockSpec((block_rows, LANES), in_map),
                pl.BlockSpec((block_rows, LANES), in_map),
            ],
            out_specs=pl.BlockSpec((None, acc_rows, LANES), lambda c, i: (c, 0, 0)),
        ),
        compiler_params=pltpu.CompilerParams(**compiler_kwargs),
        cost_estimate=cost,
    )(p2, l2)
    return jnp.sum(partials)


def focal_loss_binary(preds, labels, alpha=ALPHA, gamma=GAMMA):
    """preds, labels: matching shape (e.g. NCHW), any float dtype. Returns f32 scalar."""
    # TODO(synk): ignore_index / weight paths of the PyTorch module are not
    # implemented (defaults are None; the torch ignore path also references an
    # undefined `self.ignore`).
    assert preds.shape == labels.shape
    n_valid = preds.size
    if n_valid == 0:
        return jnp.float32(float("nan"))  # torch: mean over empty -> nan

    plan = _chip_plan()
    flat_p = preds.reshape(-1)
    flat_l = labels.reshape(-1)
    rows = n_valid // LANES
    n_main = rows * LANES

    total = jnp.float32(0.0)
    if rows > 0:
        # 128-aligned prefix handled by the kernel (no padding / copying).
        p2 = flat_p[:n_main].reshape(rows, LANES)
        l2 = flat_l[:n_main].reshape(rows, LANES)
        total = total + _bce_sum_pallas(p2, l2, plan)
    if n_main != n_valid:
        # < 128-element ragged tail: tiny XLA-side reduction.
        xt = flat_p[n_main:].astype(jnp.float32)
        yt = flat_l[n_main:].astype(jnp.float32)
        total = total + jnp.sum(
            jnp.maximum(xt, 0.0) - xt * yt + jnp.log1p(jnp.exp(-jnp.abs(xt))))

    mean_bce = total / jnp.float32(n_valid)
    logpt = -mean_bce
    pt = jnp.exp(logpt)
    return -((1.0 - pt) ** gamma) * jnp.float32(alpha) * logpt


def _reference(preds, labels, alpha=ALPHA, gamma=GAMMA):
    x = preds.astype(jnp.float32)
    y = labels.astype(jnp.float32)
    bce = jnp.mean(jnp.maximum(x, 0.0) - x * y + jnp.log1p(jnp.exp(-jnp.abs(x))))
    logpt = -bce
    pt = jnp.exp(logpt)
    return -((1.0 - pt) ** gamma) * alpha * logpt


if __name__ == "__main__":
    key = jax.random.PRNGKey(0)
    k1, k2 = jax.random.split(key)
    # Small NCHW shapes consistent with a binary segmentation loss.
    preds = jax.random.normal(k1, (2, 4, 16, 16), dtype=jnp.float32)
    labels = (jax.random.uniform(k2, (2, 4, 16, 16)) > 0.5).astype(jnp.float32)

    loss_fn = jax.jit(focal_loss_binary)
    loss = jax.block_until_ready(loss_fn(preds, labels))

    ref = _reference(preds, labels)
    assert jnp.allclose(loss, ref, rtol=1e-5, atol=1e-6), (loss, ref)
    print("KERNEL_OK")
</pallas_src>

<mosaic_0001>
module attributes {stable_mosaic.version = 11 : i64} {
  func.func @_bce_sum_kernel(%arg0: i32, %arg1: i32, %arg2: memref<16x128xf32, #tpu.memory_space<vmem>>, %arg3: memref<16x128xf32, #tpu.memory_space<vmem>>, %arg4: memref<1x8x128xf32, #tpu.memory_space<vmem>>) attributes {dimension_semantics = [#tpu.dimension_semantics<parallel>, #tpu.dimension_semantics<arbitrary>], iteration_bounds = array<i64: 1, 1>, scalar_prefetch = 0 : i64, scratch_operands = 0 : i64, tpu.core_type = #tpu.core_type<tc>, window_params = [{transform_indices = @transform_0, window_bounds = array<i64: 16, 128>}, {transform_indices = @transform_1, window_bounds = array<i64: 16, 128>}, {transform_indices = @transform_2, window_bounds = array<i64: 1, 8, 128>}]} {
    %c0_i32 = arith.constant 0 : i32
    %0 = arith.cmpi eq, %arg1, %c0_i32 : i32
    %1 = arith.extui %0 : i1 to i32
    %c0_i32_0 = arith.constant 0 : i32
    %2 = arith.cmpi ne, %1, %c0_i32_0 : i32
    scf.if %2 {
      %cst = arith.constant 0.000000e+00 : f32
      %9 = vector.broadcast %cst : f32 to vector<8x128xf32>
      %c0 = arith.constant 0 : index
      %c0_3 = arith.constant 0 : index
      %c0_4 = arith.constant 0 : index
      %10 = vector.load %arg4[%c0, %c0_3, %c0_4] : memref<1x8x128xf32, #tpu.memory_space<vmem>>, vector<1x8x128xf32>
      %11 = vector.shape_cast %10 : vector<1x8x128xf32> to vector<8x128xf32>
      %12 = vector.shape_cast %9 : vector<8x128xf32> to vector<1x8x128xf32>
      tpu.vector_store %arg4[%c0, %c0_3, %c0_4], %12 {strides = array<i32>} : memref<1x8x128xf32, #tpu.memory_space<vmem>>, vector<1x8x128xf32>,
    } else {
    }
    %c1_i32 = arith.constant 1 : i32
    %3 = arith.muli %arg0, %c1_i32 : i32
    %4 = arith.addi %3, %arg1 : i32
    %c16_i32 = arith.constant 16 : i32
    %5 = arith.muli %4, %c16_i32 : i32
    %c16_i32_1 = arith.constant 16 : i32
    %6 = arith.cmpi slt, %5, %c16_i32_1 : i32
    %7 = arith.extui %6 : i1 to i32
    %c0_i32_2 = arith.constant 0 : i32
    %8 = arith.cmpi ne, %7, %c0_i32_2 : i32
    scf.if %8 {
      %c0 = arith.constant 0 : index
      %c0_3 = arith.constant 0 : index
      %9 = vector.load %arg2[%c0, %c0_3] : memref<16x128xf32, #tpu.memory_space<vmem>>, vector<16x128xf32>
      %c0_4 = arith.constant 0 : index
      %c0_5 = arith.constant 0 : index
      %10 = vector.load %arg3[%c0_4, %c0_5] : memref<16x128xf32, #tpu.memory_space<vmem>>, vector<16x128xf32>
      %cst = arith.constant 0.000000e+00 : f32
      %11 = vector.broadcast %cst : f32 to vector<16x128xf32>
      %12 = arith.maximumf %9, %11 : vector<16x128xf32>
      %13 = arith.mulf %9, %10 : vector<16x128xf32>
      %14 = arith.subf %12, %13 : vector<16x128xf32>
      %15 = math.absf %9 : vector<16x128xf32>
      %cst_6 = arith.constant 0.000000e+00 : f32
      %16 = vector.broadcast %cst_6 : f32 to vector<16x128xf32>
      %17 = arith.subf %16, %15 : vector<16x128xf32>
      %18 = math.exp %17 : vector<16x128xf32>
      %19 = math.log1p %18 : vector<16x128xf32>
      %20 = arith.addf %14, %19 : vector<16x128xf32>
      %c16_i32_7 = arith.constant 16 : i32
      %21 = arith.addi %5, %c16_i32_7 : i32
      %c16_i32_8 = arith.constant 16 : i32
      %22 = arith.cmpi sle, %21, %c16_i32_8 : i32
      %23 = arith.extui %22 : i1 to i32
      %c0_i32_9 = arith.constant 0 : i32
      %24 = arith.cmpi ne, %23, %c0_i32_9 : i32
      scf.if %24 {
        %28 = vector.shape_cast %20 : vector<16x128xf32> to vector<2x8x128xf32>
        %cst_11 = arith.constant dense<0.000000e+00> : vector<8x128xf32>
        %29 = vector.multi_reduction <add>, %28, %cst_11 [0] : vector<2x8x128xf32> to vector<8x128xf32>
        %c0_12 = arith.constant 0 : index
        %c0_13 = arith.constant 0 : index
        %c0_14 = arith.constant 0 : index
        %30 = vector.load %arg4[%c0_12, %c0_13, %c0_14] : memref<1x8x128xf32, #tpu.memory_space<vmem>>, vector<1x8x128xf32>
        %31 = vector.shape_cast %30 : vector<1x8x128xf32> to vector<8x128xf32>
        %32 = arith.addf %31, %29 : vector<8x128xf32>
        %c0_15 = arith.constant 0 : index
        %c0_16 = arith.constant 0 : index
        %c0_17 = arith.constant 0 : index
        %33 = vector.load %arg4[%c0_15, %c0_16, %c0_17] : memref<1x8x128xf32, #tpu.memory_space<vmem>>, vector<1x8x128xf32>
        %34 = vector.shape_cast %33 : vector<1x8x128xf32> to vector<8x128xf32>
        %35 = vector.shape_cast %32 : vector<8x128xf32> to vector<1x8x128xf32>
        tpu.vector_store %arg4[%c0_15, %c0_16, %c0_17], %35 {strides = array<i32>} : memref<1x8x128xf32, #tpu.memory_space<vmem>>, vector<1x8x128xf32>,
      } else {
      }
      %true = arith.constant true
      %25 = arith.xori %22, %true : i1
      %26 = arith.extui %25 : i1 to i32
      %c0_i32_10 = arith.constant 0 : i32
      %27 = arith.cmpi ne, %26, %c0_i32_10 : i32
      scf.if %27 {
        %28 = tpu.iota {dimensions = array<i32: 0>} : vector<16x128xi32>
        %c16_i32_11 = arith.constant 16 : i32
        %29 = arith.subi %c16_i32_11, %5 : i32
        %30 = vector.broadcast %29 : i32 to vector<16x128xi32>
        %31 = arith.cmpi slt, %28, %30 : vector<16x128xi32>
        %cst_12 = arith.constant 0.000000e+00 : f32
        %32 = vector.broadcast %cst_12 : f32 to vector<16x128xf32>
        %33 = arith.select %31, %20, %32 : vector<16x128xi1>, vector<16x128xf32>
        %34 = vector.shape_cast %33 : vector<16x128xf32> to vector<2x8x128xf32>
        %cst_13 = arith.constant dense<0.000000e+00> : vector<8x128xf32>
        %35 = vector.multi_reduction <add>, %34, %cst_13 [0] : vector<2x8x128xf32> to vector<8x128xf32>
        %c0_14 = arith.constant 0 : index
        %c0_15 = arith.constant 0 : index
        %c0_16 = arith.constant 0 : index
        %36 = vector.load %arg4[%c0_14, %c0_15, %c0_16] : memref<1x8x128xf32, #tpu.memory_space<vmem>>, vector<1x8x128xf32>
        %37 = vector.shape_cast %36 : vector<1x8x128xf32> to vector<8x128xf32>
        %38 = arith.addf %37, %35 : vector<8x128xf32>
        %c0_17 = arith.constant 0 : index
        %c0_18 = arith.constant 0 : index
        %c0_19 = arith.constant 0 : index
        %39 = vector.load %arg4[%c0_17, %c0_18, %c0_19] : memref<1x8x128xf32, #tpu.memory_space<vmem>>, vector<1x8x128xf32>
        %40 = vector.shape_cast %39 : vector<1x8x128xf32> to vector<8x128xf32>
        %41 = vector.shape_cast %38 : vector<8x128xf32> to vector<1x8x128xf32>
        tpu.vector_store %arg4[%c0_17, %c0_18, %c0_19], %41 {strides = array<i32>} : memref<1x8x128xf32, #tpu.memory_space<vmem>>, vector<1x8x128xf32>,
      } else {
      }
    } else {
    }
    return
  }
  func.func @transform_0(%arg0: i32, %arg1: i32) -> (i32, i32) {
    %c1_i32 = arith.constant 1 : i32
    %0 = arith.muli %arg0, %c1_i32 : i32
    %1 = arith.addi %0, %arg1 : i32
    %c0_i32 = arith.constant 0 : i32
    %2 = arith.minsi %1, %c0_i32 : i32
    %c0_i32_0 = arith.constant 0 : i32
    %c0_i32_1 = arith.constant 0 : i32
    return %2, %c0_i32_0 : i32, i32
  }
  func.func @transform_1(%arg0: i32, %arg1: i32) -> (i32, i32) {
    %c1_i32 = arith.constant 1 : i32
    %0 = arith.muli %arg0, %c1_i32 : i32
    %1 = arith.addi %0, %arg1 : i32
    %c0_i32 = arith.constant 0 : i32
    %2 = arith.minsi %1, %c0_i32 : i32
    %c0_i32_0 = arith.constant 0 : i32
    %c0_i32_1 = arith.constant 0 : i32
    return %2, %c0_i32_0 : i32, i32
  }
  func.func @transform_2(%arg0: i32, %arg1: i32) -> (i32, i32, i32) {
    %c0_i32 = arith.constant 0 : i32
    %c0_i32_0 = arith.constant 0 : i32
    %c0_i32_1 = arith.constant 0 : i32
    return %arg0, %c0_i32, %c0_i32_0 : i32, i32, i32
  }
}

</mosaic_0001>

<bundles_post_ra>
// kernel: focal_loss_binary.1
= control target key start
LH: loop header
LB: loop body
LE: loop exit
PB: predicated region body
PF: predicated region fallthrough
CT: control target
= control target key end

     0   :  { %s205_s0 = inlined_call_operand.vmem [shape: f32[16,128], index: 0, kind: input, shape index: {}]   ;;  %s206_s1 = inlined_call_operand.vmem [shape: f32[16,128], index: 1, kind: input, shape index: {}]   ;;  %s207_s2 = inlined_call_operand.vmem [shape: f32[1,8,128], index: 2, kind: output, shape index: {}]  }
   0x1   :  { %v86_v0 = vld [vmem:[%s205_s0] sm:$0xff]  ;;  %v87_v1 = vld [vmem:[%s205_s0 + $0x8] sm:$0xff] }
   0x2   :  { %v96_v2 = vand.u32 2147483647, %v86_v0  ;;  %v97_v3 = vand.u32 2147483647, %v87_v1  ;;  %v88_v14 = vld [vmem:[%s206_s1] sm:$0xff]  ;;  %v89_v15 = vld [vmem:[%s206_s1 + $0x8] sm:$0xff] }
   0x3   :  { %v90_v17 = vmax.f32 %v86_v0, 0.0  ;;  %v92_v18 = vmul.f32 %v88_v14, %v86_v0  ;;  %v91_v21 = vmax.f32 %v87_v1, 0.0  ;;  %v93_v22 = vmul.f32 %v89_v15, %v87_v1 }
   0x4   :  { %v98_v4 = vsub.f32 0.0, %v96_v2  ;;  %v99_v5 = vsub.f32 0.0, %v97_v3 }
   0x5   :  { %v94_v26 = vsub.f32 %v90_v17, %v92_v18  ;;  %v95_v29 = vsub.f32 %v91_v21, %v93_v22 }
   0x6   :  { %v100_v6 = vmul.f32 1.442695, %v98_v4  ;;  %v102_v7 = vmul.f32 1.442695, %v99_v5 }
   0x8   :  { %167 = vpow2.f32 %v100_v6 }
   0x9   :  { %169 = vpow2.f32 %v102_v7 }
  0x15   :  { %v168_v8 = vpop.eup %167 }
  0x16   :  { %v170_v9 = vpop.eup %169  ;;  %v104_v10 = vadd.f32 1.0, %v168_v8  ;;  %v107_v12 = vmul.f32 -0.5, %v168_v8  ;;  %v110_v19 = vand.u32 2147483647, %v168_v8 }
  0x17   :  { %v113_v11 = vadd.f32 1.0, %v170_v9  ;;  %v116_v13 = vmul.f32 -0.5, %v170_v9  ;;  %v119_v23 = vand.u32 2147483647, %v170_v9 }
  0x18   :  { %171 = vlog2.f32 %v104_v10  ;;  %v108_v16 = vadd.f32 1.0, %v107_v12  ;;  %vm111_vm0 = vcmp.lt.f32.partialorder %v110_v19, 0.0004427343 }
  0x19   :  { %173 = vlog2.f32 %v113_v11  ;;  %v117_v20 = vadd.f32 1.0, %v116_v13  ;;  %vm120_vm1 = vcmp.lt.f32.partialorder %v119_v23, 0.0004427343 }
  0x1a   :  { %v109_v24 = vmul.f32 %v168_v8, %v108_v16 }
  0x1b   :  { %v118_v27 = vmul.f32 %v170_v9, %v117_v20 }
  0x25   :  { %v172_v25 = vpop.eup %171 }
  0x26   :  { %v174_v28 = vpop.eup %173  ;;  %v106_v30 = vmul.f32 0.6931472, %v172_v25 }
  0x27   :  { %v115_v31 = vmul.f32 0.6931472, %v174_v28 }
  0x28   :  { %v112_v32 = vsel %vm111_vm0, %v109_v24, %v106_v30 }
  0x29   :  { %v121_v33 = vsel %vm120_vm1, %v118_v27, %v115_v31  ;;  %v122_v34 = vadd.f32 %v112_v32, %v94_v26 }
  0x2a   :  { %v123_v35 = vadd.f32 %v121_v33, %v95_v29 }
  0x2c   :  { %v129_v36 = vadd.f32 %v123_v35, %v122_v34 }
  0x2e   :  { %132 = vst [vmem:[%s207_s2] sm:$0xff] %v129_v36 }

</bundles_post_ra>
